<compile_context>
chip_gen: v5e
topology: v5e:2x2
jax: 0.10.0
libtpu: 0.0.40
codegen_flags: <defaults>
</compile_context>

<pallas_src>
import jax
import jax.numpy as jnp
import numpy as np
from jax.experimental import pallas as pl
from jax.experimental.pallas import tpu as pltpu

_VMEM_LIMIT = 32 * 1024 * 1024   # explicit so the layout scales to v7x's 64 MiB VMEM


# ------------------------------------------------------------------ params ---
def build_mlp_params(key, units):
    """Deterministic init mimicking nn.Linear's uniform(-1/sqrt(fan_in), ...)."""
    params = []
    for i in range(len(units) - 1):
        key, kw, kb = jax.random.split(key, 3)
        fan_in = units[i]
        bound = 1.0 / np.sqrt(fan_in)
        w = jax.random.uniform(kw, (units[i], units[i + 1]), jnp.float32, -bound, bound)
        b = jax.random.uniform(kb, (1, units[i + 1]), jnp.float32, -bound, bound)
        params.append((w, b))
    return params


def fuse_res_params(shared_params, domain_params_list, w_dtype=jnp.bfloat16):
    """Fuse shared + each domain MLP into one matmul chain per domain.

    Layer 0 weights are concatenated along the output dim; deeper layers use a
    block-diagonal weight so the two branches never mix (ReLU is elementwise,
    so fusion commutes with it).  Returns per layer:
        (W_stacked (14, Din_f, Dout_f) bf16, b_stacked (14, 1, Dout_f) f32)
    """
    n_layers = len(shared_params)
    assert all(len(dp) == n_layers for dp in domain_params_list)
    assert shared_params[-1][0].shape[1] == domain_params_list[0][-1][0].shape[1], \
        "shared / domain output widths must match for the residual sum"
    fused = []
    for l in range(n_layers):
        ws, bs = shared_params[l]
        w_all, b_all = [], []
        for dp in domain_params_list:
            wd, bd = dp[l]
            if l == 0:
                wf = jnp.concatenate([ws, wd], axis=1)
            else:
                top = jnp.concatenate(
                    [ws, jnp.zeros((ws.shape[0], wd.shape[1]), ws.dtype)], axis=1)
                bot = jnp.concatenate(
                    [jnp.zeros((wd.shape[0], ws.shape[1]), wd.dtype), wd], axis=1)
                wf = jnp.concatenate([top, bot], axis=0)
            w_all.append(wf)
            b_all.append(jnp.concatenate([bs, bd], axis=1))
        fused.append((jnp.stack(w_all, 0).astype(w_dtype),
                      jnp.stack(b_all, 0).astype(jnp.float32)))
    return fused


# ----------------------------------------------------------------- kernels ---
def _make_shared_kernel(n_layers):
    """Eval path: plain MLP chain on one (TILE_B, D0) batch tile."""
    def kernel(x_ref, *refs):
        out_ref = refs[-1]
        p = refs[:-1]                          # w0, b0, w1, b1, ...
        h = x_ref[...].astype(jnp.bfloat16)
        for l in range(n_layers):
            w = p[2 * l][...]                  # (Din, Dout) bf16
            b = p[2 * l + 1][...]              # (1, Dout)   f32
            h = jnp.dot(h, w, preferred_element_type=jnp.float32) + b
            h = jnp.maximum(h, 0.0)            # Dropout == identity at inference
            if l < n_layers - 1:
                h = h.astype(jnp.bfloat16)
        out_ref[...] = h.astype(out_ref.dtype)
    return kernel


def _make_fused_train_kernel(n_layers, out_dim):
    """Train path: fused [shared | domain[index]] chain; residual sum of halves."""
    def kernel(idx_ref, x_ref, *refs):
        del idx_ref                            # selection already done by index_maps
        out_ref = refs[-1]
        p = refs[:-1]
        h = x_ref[...].astype(jnp.bfloat16)
        for l in range(n_layers):
            w = p[2 * l][...]                  # (Din_f, Dout_f) bf16 (domain dim squeezed)
            b = p[2 * l + 1][...]              # (1, Dout_f)     f32
            h = jnp.dot(h, w, preferred_element_type=jnp.float32) + b
            h = jnp.maximum(h, 0.0)
            if l < n_layers - 1:
                h = h.astype(jnp.bfloat16)
        # TODO(synk): training-time stochastic dropout not applied (would need
        # pltpu.prng_seed + prng_random_bits masking); matches dropout p == 0.
        out_ref[...] = (h[:, :out_dim] + h[:, out_dim:]).astype(out_ref.dtype)
    return kernel


# ---------------------------------------------------------------- wrappers ---
def _pad_batch(x, tile_b):
    b = x.shape[0]
    bp = ((b + tile_b - 1) // tile_b) * tile_b
    if bp != b:
        x = jnp.pad(x, ((0, bp - b), (0, 0)))
    return x, bp


def res_encoder_eval(x, shared_params_k, *, tile_b=128):
    """is_train=False path: y = shared_mlp(X)."""
    b, d0 = x.shape
    xp, bp = _pad_batch(x, tile_b)
    n_layers = len(shared_params_k)
    out_dim = shared_params_k[-1][0].shape[1]

    in_specs = [pl.BlockSpec((tile_b, d0), lambda i: (i, 0))]
    for (w, bias) in shared_params_k:          # constant index_map -> VMEM-resident
        in_specs.append(pl.BlockSpec(w.shape, lambda i: (0, 0)))
        in_specs.append(pl.BlockSpec(bias.shape, lambda i: (0, 0)))

    grid_spec = pltpu.PrefetchScalarGridSpec(
        num_scalar_prefetch=0,
        grid=(bp // tile_b,),
        in_specs=in_specs,
        out_specs=pl.BlockSpec((tile_b, out_dim), lambda i: (i, 0)),
    )
    flat = [a for wb in shared_params_k for a in wb]
    y = pl.pallas_call(
        _make_shared_kernel(n_layers),
        grid_spec=grid_spec,
        out_shape=jax.ShapeDtypeStruct((bp, out_dim), x.dtype),
        compiler_params=pltpu.CompilerParams(
            dimension_semantics=("parallel",),   # megacore split on v7x
            vmem_limit_bytes=_VMEM_LIMIT),
    )(xp, *flat)
    return y[:b]


def res_encoder_train(x, fused_params_k, index, *, tile_b=128):
    """is_train=True path: y = shared_mlp(X) + domain_mlp[index](X) (fused chain)."""
    b, d0 = x.shape
    xp, bp = _pad_batch(x, tile_b)
    n_layers = len(fused_params_k)
    fused_out = fused_params_k[-1][0].shape[2]
    assert fused_out % 2 == 0
    out_dim = fused_out // 2

    in_specs = [pl.BlockSpec((tile_b, d0), lambda i, idx: (i, 0))]
    for (w, bias) in fused_params_k:   # w: (14, Din_f, Dout_f), b: (14, 1, Dout_f)
        in_specs.append(pl.BlockSpec((pl.Squeezed(),) + tuple(w.shape[1:]),
                                     lambda i, idx: (idx[0], 0, 0)))
        in_specs.append(pl.BlockSpec((pl.Squeezed(),) + tuple(bias.shape[1:]),
                                     lambda i, idx: (idx[0], 0, 0)))

    grid_spec = pltpu.PrefetchScalarGridSpec(
        num_scalar_prefetch=1,         # domain index -> SMEM, consumed by index_maps
        grid=(bp // tile_b,),
        in_specs=in_specs,
        out_specs=pl.BlockSpec((tile_b, out_dim), lambda i, idx: (i, 0)),
    )
    flat = [a for wb in fused_params_k for a in wb]
    idx_arr = jnp.asarray([index], dtype=jnp.int32)
    y = pl.pallas_call(
        _make_fused_train_kernel(n_layers, out_dim),
        grid_spec=grid_spec,
        out_shape=jax.ShapeDtypeStruct((bp, out_dim), x.dtype),
        compiler_params=pltpu.CompilerParams(
            dimension_semantics=("parallel",),
            vmem_limit_bytes=_VMEM_LIMIT),
    )(idx_arr, xp, *flat)
    return y[:b]


# -------------------------------------------------------------- references ---
def _mlp_ref_bf16(x, params):
    """Pure-JAX reference with the kernel's numerics (bf16 matmuls, f32 epilogue)."""
    h = x.astype(jnp.bfloat16)
    n = len(params)
    for l, (w, bias) in enumerate(params):
        h = jnp.dot(h, w.astype(jnp.bfloat16), preferred_element_type=jnp.float32) + bias
        h = jnp.maximum(h, 0.0)
        if l < n - 1:
            h = h.astype(jnp.bfloat16)
    return h


def _mlp_ref_f32(x, params):
    """Host numpy f32 reference matching the PyTorch module semantics."""
    h = np.asarray(x, np.float32)
    for (w, bias) in params:
        h = np.maximum(h @ np.asarray(w, np.float32) + np.asarray(bias, np.float32), 0.0)
    return h


if __name__ == "__main__":
    B, TILE_B = 512, 128                       # 4 grid steps -> pipelined & megacore-split
    shared_units = [32, 64, 32]
    domain_units = [32, 64, 32]
    NUM_DOMAINS = 14
    dropout = 0.1                              # identity here (see TODO in kernel)

    key = jax.random.PRNGKey(0)
    kx, ks, *kd = jax.random.split(key, 2 + NUM_DOMAINS)
    x = jax.random.normal(kx, (B, shared_units[0]), jnp.float32)
    shared_params = build_mlp_params(ks, shared_units)
    domain_params = [build_mlp_params(kd[d], domain_units) for d in range(NUM_DOMAINS)]

    # One-time kernel-side packing (analogous to weight loading).
    shared_params_k = [(w.astype(jnp.bfloat16), bias) for (w, bias) in shared_params]
    fused_params_k = fuse_res_params(shared_params, domain_params)

    # --- eval path (is_train=False): shared encoder only -------------------
    y_eval = jax.block_until_ready(res_encoder_eval(x, shared_params_k, tile_b=TILE_B))
    np.testing.assert_allclose(np.asarray(y_eval),
                               np.asarray(_mlp_ref_bf16(x, shared_params)),
                               rtol=1e-3, atol=1e-3)
    np.testing.assert_allclose(np.asarray(y_eval), _mlp_ref_f32(x, shared_params),
                               rtol=5e-2, atol=5e-2)

    # --- train path (is_train=True): shared + domain_bias[index] -----------
    index = 3
    y_train = jax.block_until_ready(
        res_encoder_train(x, fused_params_k, index, tile_b=TILE_B))
    ref_bf16 = (_mlp_ref_bf16(x, shared_params)
                + _mlp_ref_bf16(x, domain_params[index]))
    np.testing.assert_allclose(np.asarray(y_train), np.asarray(ref_bf16),
                               rtol=1e-3, atol=1e-3)
    ref_f32 = _mlp_ref_f32(x, shared_params) + _mlp_ref_f32(x, domain_params[index])
    np.testing.assert_allclose(np.asarray(y_train), ref_f32, rtol=5e-2, atol=5e-2)

    print("KERNEL_OK")
</pallas_src>

<mosaic_0001>
module attributes {stable_mosaic.version = 11 : i64} {
  func.func @kernel(%arg0: i32, %arg1: memref<128x32xf32, #tpu.memory_space<vmem>>, %arg2: memref<32x64xbf16, #tpu.memory_space<vmem>>, %arg3: memref<1x64xf32, #tpu.memory_space<vmem>>, %arg4: memref<64x32xbf16, #tpu.memory_space<vmem>>, %arg5: memref<1x32xf32, #tpu.memory_space<vmem>>, %arg6: memref<128x32xf32, #tpu.memory_space<vmem>>) attributes {dimension_semantics = [#tpu.dimension_semantics<parallel>], iteration_bounds = array<i64: 4>, scalar_prefetch = 0 : i64, scratch_operands = 0 : i64, tpu.core_type = #tpu.core_type<tc>, window_params = [{transform_indices = @transform_0, window_bounds = array<i64: 128, 32>}, {pipeline_mode = #tpu.pipeline_mode<synchronous>, transform_indices = @transform_1, window_bounds = array<i64: 32, 64>}, {pipeline_mode = #tpu.pipeline_mode<synchronous>, transform_indices = @transform_2, window_bounds = array<i64: 1, 64>}, {pipeline_mode = #tpu.pipeline_mode<synchronous>, transform_indices = @transform_3, window_bounds = array<i64: 64, 32>}, {pipeline_mode = #tpu.pipeline_mode<synchronous>, transform_indices = @transform_4, window_bounds = array<i64: 1, 32>}, {transform_indices = @transform_5, window_bounds = array<i64: 128, 32>}]} {
    %c0 = arith.constant 0 : index
    %c0_0 = arith.constant 0 : index
    %0 = vector.load %arg1[%c0, %c0_0] : memref<128x32xf32, #tpu.memory_space<vmem>>, vector<128x32xf32>
    %1 = arith.truncf %0 : vector<128x32xf32> to vector<128x32xbf16>
    %c0_1 = arith.constant 0 : index
    %c0_2 = arith.constant 0 : index
    %2 = vector.load %arg2[%c0_1, %c0_2] : memref<32x64xbf16, #tpu.memory_space<vmem>>, vector<32x64xbf16>
    %c0_3 = arith.constant 0 : index
    %c0_4 = arith.constant 0 : index
    %3 = vector.load %arg3[%c0_3, %c0_4] : memref<1x64xf32, #tpu.memory_space<vmem>>, vector<1x64xf32>
    %cst = arith.constant dense<0.000000e+00> : vector<128x64xf32>
    %4 = tpu.matmul %1, %2, %cst {dimension_numbers = #tpu.dot_dimension_numbers<[1], [0], [0], [1], [0, 0, 1, 1], [], []>} : vector<128x32xbf16>, vector<32x64xbf16>, vector<128x64xf32> -> vector<128x64xf32>
    %5 = vector.broadcast %3 : vector<1x64xf32> to vector<128x64xf32>
    %6 = arith.addf %4, %5 : vector<128x64xf32>
    %cst_5 = arith.constant 0.000000e+00 : f32
    %7 = vector.broadcast %cst_5 : f32 to vector<128x64xf32>
    %8 = arith.maximumf %6, %7 : vector<128x64xf32>
    %9 = arith.truncf %8 : vector<128x64xf32> to vector<128x64xbf16>
    %c0_6 = arith.constant 0 : index
    %c0_7 = arith.constant 0 : index
    %10 = vector.load %arg4[%c0_6, %c0_7] : memref<64x32xbf16, #tpu.memory_space<vmem>>, vector<64x32xbf16>
    %c0_8 = arith.constant 0 : index
    %c0_9 = arith.constant 0 : index
    %11 = vector.load %arg5[%c0_8, %c0_9] : memref<1x32xf32, #tpu.memory_space<vmem>>, vector<1x32xf32>
    %cst_10 = arith.constant dense<0.000000e+00> : vector<128x32xf32>
    %12 = tpu.matmul %9, %10, %cst_10 {dimension_numbers = #tpu.dot_dimension_numbers<[1], [0], [0], [1], [0, 0, 1, 1], [], []>} : vector<128x64xbf16>, vector<64x32xbf16>, vector<128x32xf32> -> vector<128x32xf32>
    %13 = vector.broadcast %11 : vector<1x32xf32> to vector<128x32xf32>
    %14 = arith.addf %12, %13 : vector<128x32xf32>
    %cst_11 = arith.constant 0.000000e+00 : f32
    %15 = vector.broadcast %cst_11 : f32 to vector<128x32xf32>
    %16 = arith.maximumf %14, %15 : vector<128x32xf32>
    %c0_12 = arith.constant 0 : index
    %c0_13 = arith.constant 0 : index
    %17 = vector.load %arg6[%c0_12, %c0_13] : memref<128x32xf32, #tpu.memory_space<vmem>>, vector<128x32xf32>
    tpu.vector_store %arg6[%c0_12, %c0_13], %16 {strides = array<i32>} : memref<128x32xf32, #tpu.memory_space<vmem>>, vector<128x32xf32>,
    return
  }
  func.func @transform_0(%arg0: i32) -> (i32, i32) {
    %c0_i32 = arith.constant 0 : i32
    %c0_i32_0 = arith.constant 0 : i32
    return %arg0, %c0_i32 : i32, i32
  }
  func.func @transform_1(%arg0: i32) -> (i32, i32) {
    %c0_i32 = arith.constant 0 : i32
    %c0_i32_0 = arith.constant 0 : i32
    %c0_i32_1 = arith.constant 0 : i32
    return %c0_i32, %c0_i32_0 : i32, i32
  }
  func.func @transform_2(%arg0: i32) -> (i32, i32) {
    %c0_i32 = arith.constant 0 : i32
    %c0_i32_0 = arith.constant 0 : i32
    %c0_i32_1 = arith.constant 0 : i32
    return %c0_i32, %c0_i32_0 : i32, i32
  }
  func.func @transform_3(%arg0: i32) -> (i32, i32) {
    %c0_i32 = arith.constant 0 : i32
    %c0_i32_0 = arith.constant 0 : i32
    %c0_i32_1 = arith.constant 0 : i32
    return %c0_i32, %c0_i32_0 : i32, i32
  }
  func.func @transform_4(%arg0: i32) -> (i32, i32) {
    %c0_i32 = arith.constant 0 : i32
    %c0_i32_0 = arith.constant 0 : i32
    %c0_i32_1 = arith.constant 0 : i32
    return %c0_i32, %c0_i32_0 : i32, i32
  }
  func.func @transform_5(%arg0: i32) -> (i32, i32) {
    %c0_i32 = arith.constant 0 : i32
    %c0_i32_0 = arith.constant 0 : i32
    return %arg0, %c0_i32 : i32, i32
  }
}

</mosaic_0001>

<bundles_post_ra>
// kernel: tpu_custom_call.1
= control target key start
LH: loop header
LB: loop body
LE: loop exit
PB: predicated region body
PF: predicated region fallthrough
CT: control target
= control target key end

     0   :  { %s680_s18 = smov 0   ;;  %s796_s0 = inlined_call_operand.vmem [shape: f32[512,32], index: 0, kind: input, shape index: {}]   ;;  %s797_s1 = inlined_call_operand.vmem [shape: bf16[32,64], index: 1, kind: input, shape index: {}]   ;;  %s798_s2 = inlined_call_operand.vmem [shape: f32[1,64], index: 2, kind: input, shape index: {}]   ;;  %s799_s3 = inlined_call_operand.vmem [shape: bf16[64,32], index: 3, kind: input, shape index: {}]   ;;  %s800_s4 = inlined_call_operand.vmem [shape: f32[1,32], index: 4, kind: input, shape index: {}]   ;;  %s801_s5 = inlined_call_operand.vmem [shape: f32[512,32], index: 5, kind: output, shape index: {}]  }
   0x1 LB: > { %s569_s19 = sadd.s32 4294967295, %s648_s18   ;;  %p573_p0 = scmp.ge.s32.totalorder %s648_s18, 1  ;;  %s648_s18 = sphi %s680_s18, %s15_s18  }
   0x2   : > { %p188_p1 = scmp.lt.s32.totalorder %s648_s18, 5 }
   0x4   : > { %p189_p2 = pnand %p573_p0, %p188_p1 }
   0x5   : > { %s574_s22 = sshll.u32 (!%p189_p2), %s569_s19, 4 }
   0x6   : > { %192 = sbr.rel (%p189_p2) target bundleno = 416 (0x1a0), region = 40  ;;  %p217_p3 = scmp.lt.s32.totalorder (!%p189_p2), %s574_s22, 63 }
   0xb   : > { %v621_v0 = vld [vmem:[%s797_s1 + $0x8] sm:$0xff]  ;;  %v620_v1 = vld [vmem:[%s797_s1] sm:$0xff]  ;;  %s803_s22 = smov (!%p217_p3, %s574_s22), 63  ;;  %vm273_vm0 = vcmask 261120   ;;  %v625_v26 = vld [vmem:[%s799_s3 + $0x18] sm:$0xff]  ;;  %vm407_vm1 = vcmask 523264  }
   0xc   : > { %304 = vmatpush.bf16.msra.mxu0 %v621_v0  ;;  %626 = vmatpush.bf16.msra.mxu3 %v621_v0  ;;  %s575_s25 = sshll.u32 %s803_s22, 3  ;;  %v624_v27 = vld [vmem:[%s799_s3 + $0x10] sm:$0xff]  ;;  %v623_v28 = vld [vmem:[%s799_s3 + $0x8] sm:$0xff]  ;;  %v622_v29 = vld [vmem:[%s799_s3] sm:$0xff] }
   0xd   : > { %s220_s28 = scalar_lea.vmem %s796_s0, %s575_s25  ;;  %436 = vmatpush.bf16.msra.mxu1 %v625_v26  ;;  %628 = vmatpush.bf16.msra.mxu2 %v625_v26  ;;  %v640_v31 = vld [vmem:[%s798_s2] ss:$0 sm:$0xff]  ;;  %s744_s19 = scalar_lea.vmem %s801_s5, %s575_s25 }
   0xe   : > { %v229_v2 = vld [vmem:[%s220_s28] sm:$0xff]  ;;  %v230_v3 = vld [vmem:[%s220_s28 + $0x8] sm:$0xff]  ;;  %v231_v5 = vld [vmem:[%s220_s28 + $0x10] sm:$0xff] }
   0xf   : > { %v245_v4 = vpack.c.bf16 %v230_v3, %v229_v2  ;;  %v232_v6 = vld [vmem:[%s220_s28 + $0x18] sm:$0xff]  ;;  %v233_v8 = vld [vmem:[%s220_s28 + $0x20] sm:$0xff]  ;;  %v234_v9 = vld [vmem:[%s220_s28 + $0x28] sm:$0xff] }
  0x10   : > { %305 = vmatpush.bf16.msra.mxu0 %v620_v1  ;;  %627 = vmatpush.bf16.msra.mxu3 %v620_v1  ;;  %v246_v7 = vpack.c.bf16 %v232_v6, %v231_v5  ;;  %v247_v10 = vpack.c.bf16 %v234_v9, %v233_v8  ;;  %v239_v11 = vld [vmem:[%s220_s28 + $0x50] sm:$0xff]  ;;  %v240_v12 = vld [vmem:[%s220_s28 + $0x58] sm:$0xff]  ;;  %v241_v16 = vld [vmem:[%s220_s28 + $0x60] sm:$0xff] }
  0x11   : > { %v250_v13 = vpack.c.bf16 %v240_v12, %v239_v11  ;;  %v235_v14 = vld [vmem:[%s220_s28 + $0x30] sm:$0xff]  ;;  %v236_v15 = vld [vmem:[%s220_s28 + $0x38] sm:$0xff]  ;;  %v242_v17 = vld [vmem:[%s220_s28 + $0x68] sm:$0xff]  ;;  %437 = vmatpush.bf16.msra.mxu1 %v624_v27  ;;  %629 = vmatpush.bf16.msra.mxu2 %v624_v27 }
  0x12   : > { %v248_v18 = vpack.c.bf16 %v236_v15, %v235_v14  ;;  %v251_v19 = vpack.c.bf16 %v242_v17, %v241_v16  ;;  %v237_v20 = vld [vmem:[%s220_s28 + $0x40] sm:$0xff]  ;;  %v238_v21 = vld [vmem:[%s220_s28 + $0x48] sm:$0xff]  ;;  %v243_v22 = vld [vmem:[%s220_s28 + $0x70] sm:$0xff] }
  0x13   : > { %586 = vmatmul.msk.bf16.vlgmr.msra.gmra.mxu0 %vm273_vm0, %v245_v4  ;;  %591 = vmatmul.msk.bf16.vlgmr.msra.gmra.mxu3 %vm273_vm0, %v250_v13  ;;  %v244_v23 = vld [vmem:[%s220_s28 + $0x78] sm:$0xff]  ;;  %v249_v24 = vpack.c.bf16 %v238_v21, %v237_v20 }
  0x14   : > { %v252_v25 = vpack.c.bf16 %v244_v23, %v243_v22  ;;  %v736_v23 = vld [vmem:[%s800_s4] ss:$0 sm:$0xff] }
  0x15   : > { %438 = vmatpush.bf16.msra.mxu1 %v623_v28  ;;  %630 = vmatpush.bf16.msra.mxu2 %v623_v28 }
  0x19   : > { %439 = vmatpush.bf16.msra.mxu1 %v622_v29  ;;  %631 = vmatpush.bf16.msra.mxu2 %v622_v29 }
  0x23   : > { %587 = vmatmul.msk.bf16.gmra.mxu0 %vm273_vm0, %v246_v7  ;;  %592 = vmatmul.msk.bf16.gmra.mxu3 %vm273_vm0, %v251_v19 }
  0x33   : > { %588 = vmatmul.msk.bf16.gmra.mxu0 %vm273_vm0, %v247_v10  ;;  %593 = vmatmul.msk.bf16.gmra.mxu3 %vm273_vm0, %v252_v25 }
  0x43   : > { %589 = vmatmul.msk.bf16.gmra.mxu0 %vm273_vm0, %v248_v18 }
  0x53   : > { %590 = vmatmul.msk.bf16.gmra.mxu0 %vm273_vm0, %v249_v24 }
  0x90   : > { %v307_v30 = vpop.f32.mrf.mxu0 }
  0x91   : > { %v308_v32 = vadd.f32 %v640_v31, %v307_v30 }
  0x93   : > { %v347_v35 = vmax.f32 %v308_v32, 0.0 }
  0x96   : > { %v332_v60 = vpop.f32.mrf.mxu3 }
  0x97   : > { %v333_v5 = vadd.f32 %v640_v31, %v332_v60 }
  0x98   : > { %v309_v33 = vpop.f32.mrf.mxu0 }
  0x99   : > { %v310_v34 = vadd.f32 %v640_v31, %v309_v33  ;;  %v357_v7 = vmax.f32 %v333_v5, 0.0 }
  0x9b   : > { %v348_v36 = vmax.f32 %v310_v34, 0.0 }
  0x9d   : > { %v363_v37 = vpack.c.bf16 %v348_v36, %v347_v35 }
  0x9e   : > { %v334_v0 = vpop.f32.mrf.mxu3 }
  0x9f   : > { %610 = vmatmul.msk.bf16.vlgmr.msra.gmra.mxu1 %vm407_vm1, %v363_v37  ;;  %v335_v6 = vadd.f32 %v640_v31, %v334_v0 }
  0xa0   : > { %v312_v38 = vpop.f32.mrf.mxu0 }
  0xa1   : > { %v313_v39 = vadd.f32 %v640_v31, %v312_v38  ;;  %v358_v8 = vmax.f32 %v335_v6, 0.0 }
  0xa3   : > { %v349_v42 = vmax.f32 %v313_v39, 0.0  ;;  %v368_v9 = vpack.c.bf16 %v358_v8, %v357_v7 }
  0xa6   : > { %v337_v4 = vpop.f32.mrf.mxu3 }
  0xa7   : > { %v338_v11 = vadd.f32 %v640_v31, %v337_v4 }
  0xa8   : > { %v314_v40 = vpop.f32.mrf.mxu0 }
  0xa9   : > { %v315_v41 = vadd.f32 %v640_v31, %v314_v40  ;;  %v359_v14 = vmax.f32 %v338_v11, 0.0 }
  0xab   : > { %v350_v43 = vmax.f32 %v315_v41, 0.0 }
  0xad   : > { %v364_v44 = vpack.c.bf16 %v350_v43, %v349_v42 }
  0xae   : > { %v339_v10 = vpop.f32.mrf.mxu3 }
  0xaf   : > { %611 = vmatmul.msk.bf16.gmra.mxu1 %vm407_vm1, %v364_v44  ;;  %v340_v12 = vadd.f32 %v640_v31, %v339_v10 }
  0xb0   : > { %v317_v45 = vpop.f32.mrf.mxu0 }
  0xb1   : > { %v318_v46 = vadd.f32 %v640_v31, %v317_v45  ;;  %v360_v15 = vmax.f32 %v340_v12, 0.0 }
  0xb3   : > { %v351_v49 = vmax.f32 %v318_v46, 0.0  ;;  %v369_v16 = vpack.c.bf16 %v360_v15, %v359_v14 }
  0xb6   : > { %v342_v13 = vpop.f32.mrf.mxu3 }
  0xb7   : > { %v343_v18 = vadd.f32 %v640_v31, %v342_v13 }
  0xb8   : > { %v319_v47 = vpop.f32.mrf.mxu0 }
  0xb9   : > { %v320_v48 = vadd.f32 %v640_v31, %v319_v47  ;;  %v361_v20 = vmax.f32 %v343_v18, 0.0 }
  0xbb   : > { %v352_v50 = vmax.f32 %v320_v48, 0.0 }
  0xbd   : > { %v365_v51 = vpack.c.bf16 %v352_v50, %v351_v49 }
  0xbe   : > { %v344_v17 = vpop.f32.mrf.mxu3 }
  0xbf   : > { %612 = vmatmul.msk.bf16.gmra.mxu1 %vm407_vm1, %v365_v51  ;;  %v345_v19 = vadd.f32 %v640_v31, %v344_v17 }
  0xc0   : > { %v322_v52 = vpop.f32.mrf.mxu0 }
  0xc1   : > { %v323_v53 = vadd.f32 %v640_v31, %v322_v52  ;;  %v362_v21 = vmax.f32 %v345_v19, 0.0 }
  0xc3   : > { %v353_v56 = vmax.f32 %v323_v53, 0.0  ;;  %v370_v22 = vpack.c.bf16 %v362_v21, %v361_v20 }
  0xc8   : > { %v324_v54 = vpop.f32.mrf.mxu0 }
  0xc9   : > { %v325_v55 = vadd.f32 %v640_v31, %v324_v54 }
  0xcb   : > { %v354_v57 = vmax.f32 %v325_v55, 0.0 }
  0xcd   : > { %v366_v58 = vpack.c.bf16 %v354_v57, %v353_v56 }
  0xcf   : > { %613 = vmatmul.msk.bf16.gmra.mxu1 %vm407_vm1, %v366_v58 }
  0xd0   : > { %v327_v59 = vpop.f32.mrf.mxu0 }
  0xd1   : > { %v328_v61 = vadd.f32 %v640_v31, %v327_v59 }
  0xd3   : > { %v355_v1 = vmax.f32 %v328_v61, 0.0 }
  0xd8   : > { %v329_v62 = vpop.f32.mrf.mxu0 }
  0xd9   : > { %v330_v63 = vadd.f32 %v640_v31, %v329_v62 }
  0xdb   : > { %v356_v2 = vmax.f32 %v330_v63, 0.0 }
  0xdd   : > { %v367_v3 = vpack.c.bf16 %v356_v2, %v355_v1 }
  0xdf   : > { %614 = vmatmul.msk.bf16.vlgmr.msra.gmra.mxu2 %vm407_vm1, %v367_v3 }
  0xef   : > { %615 = vmatmul.msk.bf16.gmra.mxu2 %vm407_vm1, %v368_v9 }
  0xff   : > { %616 = vmatmul.msk.bf16.gmra.mxu2 %vm407_vm1, %v369_v16 }
 0x10f   : > { %617 = vmatmul.msk.bf16.gmra.mxu2 %vm407_vm1, %v370_v22 }
 0x11c   : > { %v441_v24 = vpop.f32.mrf.mxu1 }
 0x11d   : > { %v442_v25 = vadd.f32 %v736_v23, %v441_v24 }
 0x11f   : > { %v481_v26 = vmax.f32 %v442_v25, 0.0 }
 0x121   : > { %497 = vst.msk [vmem:[%s744_s19] sm:$0xff] %vm273_vm0, %v481_v26 }
 0x124   : > { %v443_v27 = vpop.f32.mrf.mxu1 }
 0x125   : > { %v444_v28 = vadd.f32 %v736_v23, %v443_v27 }
 0x127   : > { %v482_v29 = vmax.f32 %v444_v28, 0.0 }
 0x129   : > { %498 = vst.msk [vmem:[%s744_s19 + $0x8] sm:$0xff] %vm273_vm0, %v482_v29 }
 0x12c   : > { %v446_v30 = vpop.f32.mrf.mxu1 }
 0x12d   : > { %v447_v31 = vadd.f32 %v736_v23, %v446_v30 }
 0x12f   : > { %v483_v32 = vmax.f32 %v447_v31, 0.0 }
 0x131   : > { %499 = vst.msk [vmem:[%s744_s19 + $0x10] sm:$0xff] %vm273_vm0, %v483_v32 }
 0x134   : > { %v448_v33 = vpop.f32.mrf.mxu1 }
 0x135   : > { %v449_v34 = vadd.f32 %v736_v23, %v448_v33 }
 0x137   : > { %v484_v35 = vmax.f32 %v449_v34, 0.0 }
 0x139   : > { %500 = vst.msk [vmem:[%s744_s19 + $0x18] sm:$0xff] %vm273_vm0, %v484_v35 }
 0x13c   : > { %v451_v36 = vpop.f32.mrf.mxu1 }
 0x13d   : > { %v452_v37 = vadd.f32 %v736_v23, %v451_v36 }
 0x13f   : > { %v485_v38 = vmax.f32 %v452_v37, 0.0 }
 0x141   : > { %501 = vst.msk [vmem:[%s744_s19 + $0x20] sm:$0xff] %vm273_vm0, %v485_v38 }
 0x144   : > { %v453_v39 = vpop.f32.mrf.mxu1 }
 0x145   : > { %v454_v40 = vadd.f32 %v736_v23, %v453_v39 }
 0x147   : > { %v486_v41 = vmax.f32 %v454_v40, 0.0 }
 0x149   : > { %502 = vst.msk [vmem:[%s744_s19 + $0x28] sm:$0xff] %vm273_vm0, %v486_v41 }
 0x14c   : > { %v456_v42 = vpop.f32.mrf.mxu1 }
 0x14d   : > { %v457_v43 = vadd.f32 %v736_v23, %v456_v42 }
 0x14f   : > { %v487_v44 = vmax.f32 %v457_v43, 0.0 }
 0x151   : > { %503 = vst.msk [vmem:[%s744_s19 + $0x30] sm:$0xff] %vm273_vm0, %v487_v44 }
 0x154   : > { %v458_v45 = vpop.f32.mrf.mxu1 }
 0x155   : > { %v459_v46 = vadd.f32 %v736_v23, %v458_v45 }
 0x157   : > { %v488_v47 = vmax.f32 %v459_v46, 0.0 }
 0x159   : > { %504 = vst.msk [vmem:[%s744_s19 + $0x38] sm:$0xff] %vm273_vm0, %v488_v47 }
 0x162   : > { %v461_v48 = vpop.f32.mrf.mxu2 }
 0x163   : > { %v462_v49 = vadd.f32 %v736_v23, %v461_v48 }
 0x165   : > { %v489_v50 = vmax.f32 %v462_v49, 0.0 }
 0x167   : > { %505 = vst.msk [vmem:[%s744_s19 + $0x40] sm:$0xff] %vm273_vm0, %v489_v50 }
 0x16a   : > { %v463_v51 = vpop.f32.mrf.mxu2 }
 0x16b   : > { %v464_v52 = vadd.f32 %v736_v23, %v463_v51 }
 0x16d   : > { %v490_v53 = vmax.f32 %v464_v52, 0.0 }
 0x16f   : > { %506 = vst.msk [vmem:[%s744_s19 + $0x48] sm:$0xff] %vm273_vm0, %v490_v53 }
 0x172   : > { %v466_v54 = vpop.f32.mrf.mxu2 }
 0x173   : > { %v467_v55 = vadd.f32 %v736_v23, %v466_v54 }
 0x175   : > { %v491_v56 = vmax.f32 %v467_v55, 0.0 }
 0x177   : > { %507 = vst.msk [vmem:[%s744_s19 + $0x50] sm:$0xff] %vm273_vm0, %v491_v56 }
 0x17a   : > { %v468_v57 = vpop.f32.mrf.mxu2 }
 0x17b   : > { %v469_v58 = vadd.f32 %v736_v23, %v468_v57 }
 0x17d   : > { %v492_v59 = vmax.f32 %v469_v58, 0.0 }
 0x17f   : > { %508 = vst.msk [vmem:[%s744_s19 + $0x58] sm:$0xff] %vm273_vm0, %v492_v59 }
 0x182   : > { %v471_v60 = vpop.f32.mrf.mxu2 }
 0x183   : > { %v472_v61 = vadd.f32 %v736_v23, %v471_v60 }
 0x185   : > { %v493_v62 = vmax.f32 %v472_v61, 0.0 }
 0x187   : > { %509 = vst.msk [vmem:[%s744_s19 + $0x60] sm:$0xff] %vm273_vm0, %v493_v62 }
 0x18a   : > { %v473_v63 = vpop.f32.mrf.mxu2 }
 0x18b   : > { %v474_v0 = vadd.f32 %v736_v23, %v473_v63 }
 0x18d   : > { %v494_v1 = vmax.f32 %v474_v0, 0.0 }
 0x18f   : > { %510 = vst.msk [vmem:[%s744_s19 + $0x68] sm:$0xff] %vm273_vm0, %v494_v1 }
 0x192   : > { %v476_v2 = vpop.f32.mrf.mxu2 }
 0x193   : > { %v477_v3 = vadd.f32 %v736_v23, %v476_v2 }
 0x195   : > { %v495_v4 = vmax.f32 %v477_v3, 0.0 }
 0x197   : > { %511 = vst.msk [vmem:[%s744_s19 + $0x70] sm:$0xff] %vm273_vm0, %v495_v4 }
 0x19a   : > { %v478_v5 = vpop.f32.mrf.mxu2 }
 0x19b   : > { %v479_v6 = vadd.f32 %v736_v23, %v478_v5 }
 0x19d   : > { %v496_v7 = vmax.f32 %v479_v6, 0.0 }
 0x19f   : > { %512 = vst.msk [vmem:[%s744_s19 + $0x78] sm:$0xff] %vm273_vm0, %v496_v7 }
 0x1a0 PF: > { %s15_s18 = sadd.s32 1, %s648_s18  }
 0x1a1   : > { %p12_p4 = scmp.ge.s32.totalorder %s15_s18, 6  }
 0x1a3   :  { %14 = sbr.rel (!%p12_p4) target bundleno = 1 (0x1), region = 70 }

</bundles_post_ra>
